<compile_context>
chip_gen: v7x
topology: tpu7x:2x2x1
jax: 0.10.0
libtpu: 0.0.40
codegen_flags: <defaults>
</compile_context>

<pallas_src>
import jax
import jax.numpy as jnp
from jax.experimental import pallas as pl
from jax.experimental.pallas import tpu as pltpu

_LANE = 128
_SUBLANE = 8


def _round_up(v, m):
    return ((v + m - 1) // m) * m


def _vmem_budget_bytes():
    """Per-generation VMEM budget (bytes) for pipeline buffers + intermediates.

    v5e/v6e have 128 MiB VMEM per TensorCore, v7x only 64 MiB, and the scoped
    defaults are 16/32/32 MiB -- so query the chip and keep 25% headroom,
    falling back to a conservative 64 MiB (v7x-sized) assumption off-device.
    """
    try:
        cap = int(pltpu.get_tpu_info().vmem_capacity_bytes)
    except Exception:  # no TPU visible / interpret mode / older API
        cap = 64 * 1024 * 1024
    return max((cap * 3) // 4, 8 * 1024 * 1024)


def _x_block_spec(block_shape, index_map, block_bytes, n_steps):
    """BlockSpec for the x input; deepen pipelining when blocks are small.

    With small blocks the ~0.35us per-step overhead / DMA latency are exposed,
    so request 3-deep buffering.  Guarded so environments without the
    `pipeline_mode` kwarg degrade gracefully to the default double buffer.
    """
    if block_bytes < (256 << 10) and n_steps >= 4:
        try:
            return pl.BlockSpec(block_shape, index_map,
                                pipeline_mode=pl.Buffered(3))
        except (TypeError, AttributeError):
            pass
    return pl.BlockSpec(block_shape, index_map)


# -----------------------------------------------------------------------------
# Single-pass path: full reduction axis resident in VMEM, tiled over columns.
# -----------------------------------------------------------------------------
def _softmax_single_pass_kernel(x_ref, o_ref):
    # Stable softmax along axis 0 for one (N, tile_d) column block, in f32.
    x = x_ref[...].astype(jnp.float32)
    x_max = jnp.max(x, axis=0, keepdims=True)           # (1, tile_d)
    x_exp = jnp.exp(x - x_max)                           # (N, tile_d)
    partition = jnp.sum(x_exp, axis=0, keepdims=True)    # (1, tile_d)
    # Exact reciprocal: the kernel is HBM-bound so the EUP/VPU have slack and
    # the ~1e-3 error of the approximate path is not acceptable (columns must
    # sum to 1 to f32 precision).
    inv = pl.reciprocal(partition, approx=False)          # (1, tile_d)
    o_ref[...] = (x_exp * inv).astype(o_ref.dtype)


def _pick_single_pass_tile_d(n, d, itemsize, budget):
    """Largest multiple-of-128 column tile whose per-step footprint fits budget.

    Per lane-column footprint ~= N * (2*in + 2*out double-buffered bytes
    + ~8 B of f32 intermediates).  Returns None when even a minimal tile does
    not fit -> caller falls back to the streaming (N-tiled) path.
    """
    per_col = n * (2 * itemsize + 2 * itemsize + 8)
    max_cols = budget // per_col
    if max_cols < min(d, _LANE):
        return None
    if d <= _LANE:
        return d  # full-D block (block_shape == array dim, lane-ragged store)
    tile_d = min(_round_up(d, _LANE), (max_cols // _LANE) * _LANE)
    # v7x: keep >= 2 column blocks so ("parallel",) can shard the grid across
    # both TensorCores (neutral on single-TC v5e/v6e).
    if pl.cdiv(d, tile_d) < 2 and tile_d > _LANE:
        tile_d = max(_LANE, _round_up(pl.cdiv(d, 2), _LANE))
    return tile_d


def _softmax_single_pass(x, tile_d, vmem_limit):
    n, d = x.shape
    itemsize = jnp.dtype(x.dtype).itemsize
    n_blocks = pl.cdiv(d, tile_d)
    cost = pl.CostEstimate(flops=4 * n * d, transcendentals=n * d,
                           bytes_accessed=2 * n * d * itemsize)
    return pl.pallas_call(
        _softmax_single_pass_kernel,
        out_shape=jax.ShapeDtypeStruct((n, d), x.dtype),
        grid_spec=pltpu.PrefetchScalarGridSpec(
            num_scalar_prefetch=0,
            grid=(n_blocks,),
            in_specs=[_x_block_spec((n, tile_d), lambda j: (0, j),
                                    n * tile_d * itemsize, n_blocks)],
            out_specs=pl.BlockSpec((n, tile_d), lambda j: (0, j)),
        ),
        compiler_params=pltpu.CompilerParams(
            dimension_semantics=("parallel",),
            vmem_limit_bytes=int(vmem_limit),
        ),
        cost_estimate=cost,
    )(x)


# -----------------------------------------------------------------------------
# Streaming path: N tiled with an online (running max / rescaled sum) reduce
# kernel followed by an elementwise normalize kernel.
# -----------------------------------------------------------------------------
def _softmax_map_kernel(x_ref, m_ref, l_ref, o_ref):
    # Elementwise normalize: exp(x - max) / sum for one (tile_n, tile_d) block.
    x = x_ref[...].astype(jnp.float32)
    inv = pl.reciprocal(l_ref[...], approx=False)
    o_ref[...] = (jnp.exp(x - m_ref[...]) * inv).astype(o_ref.dtype)


def _pick_streaming_tiles(n, d, itemsize, budget):
    per_elem = 2 * itemsize + 2 * itemsize + 8
    tile_d = d if d <= _LANE else _round_up(d, _LANE)
    tile_n = min(_round_up(n, _SUBLANE), 512)
    while tile_n * tile_d * per_elem > budget:
        if tile_d > _LANE:
            tile_d = max(_LANE, ((tile_d // 2) // _LANE) * _LANE)
        elif tile_n > _SUBLANE:
            tile_n = max(_SUBLANE, ((tile_n // 2) // _SUBLANE) * _SUBLANE)
        else:
            break
    return tile_n, tile_d


def _softmax_streaming(x, tile_n, tile_d, vmem_limit):
    n, d = x.shape
    itemsize = jnp.dtype(x.dtype).itemsize
    nd = pl.cdiv(d, tile_d)
    nn = pl.cdiv(n, tile_n)
    x_block_bytes = tile_n * tile_d * itemsize

    def reduce_kernel(x_ref, m_ref, l_ref):
        # Online per-column reduction; outputs are accumulators resident
        # across the (last, "arbitrary") N grid axis.
        k = pl.program_id(1)

        @pl.when(k == 0)
        def _():
            m_ref[...] = jnp.full_like(m_ref, -jnp.inf)
            l_ref[...] = jnp.zeros_like(l_ref)

        xb = x_ref[...].astype(jnp.float32)
        # Mask out-of-bounds rows of the ragged last N block so they cannot
        # contaminate the per-column reduction.
        row = jax.lax.broadcasted_iota(jnp.int32, xb.shape, 0) + k * tile_n
        xb = jnp.where(row < n, xb, -jnp.inf)
        m_prev = m_ref[...]
        m_new = jnp.maximum(m_prev, jnp.max(xb, axis=0, keepdims=True))
        l_ref[...] = (l_ref[...] * jnp.exp(m_prev - m_new)
                      + jnp.sum(jnp.exp(xb - m_new), axis=0, keepdims=True))
        m_ref[...] = m_new

    stats_spec = pl.BlockSpec((1, tile_d), lambda j, k: (0, j))
    col_max, col_sum = pl.pallas_call(
        reduce_kernel,
        out_shape=(jax.ShapeDtypeStruct((1, d), jnp.float32),
                   jax.ShapeDtypeStruct((1, d), jnp.float32)),
        grid_spec=pltpu.PrefetchScalarGridSpec(
            num_scalar_prefetch=0,
            grid=(nd, nn),  # reduction axis last, by convention
            in_specs=[_x_block_spec((tile_n, tile_d), lambda j, k: (k, j),
                                    x_block_bytes, nd * nn)],
            out_specs=(stats_spec, stats_spec),
        ),
        compiler_params=pltpu.CompilerParams(
            dimension_semantics=("parallel", "arbitrary"),
            vmem_limit_bytes=int(vmem_limit),
        ),
    )(x)

    return pl.pallas_call(
        _softmax_map_kernel,
        out_shape=jax.ShapeDtypeStruct((n, d), x.dtype),
        grid_spec=pltpu.PrefetchScalarGridSpec(
            num_scalar_prefetch=0,
            grid=(nd, nn),
            in_specs=[_x_block_spec((tile_n, tile_d), lambda j, k: (k, j),
                                    x_block_bytes, nd * nn),
                      pl.BlockSpec((1, tile_d), lambda j, k: (0, j)),
                      pl.BlockSpec((1, tile_d), lambda j, k: (0, j))],
            out_specs=pl.BlockSpec((tile_n, tile_d), lambda j, k: (k, j)),
        ),
        compiler_params=pltpu.CompilerParams(
            dimension_semantics=("parallel", "parallel"),
            vmem_limit_bytes=int(vmem_limit),
        ),
    )(x, col_max, col_sum)


# -----------------------------------------------------------------------------
# Public wrapper
# -----------------------------------------------------------------------------
def softmax_stable(x, *, vmem_budget_bytes=None, force_streaming=False,
                   streaming_tile_n=None, streaming_tile_d=None):
    """Pallas TPU stable softmax over axis 0 (per column), matching the module."""
    assert x.ndim == 2, "this kernel expects a 2-D (N, D) input"
    n, d = x.shape
    itemsize = jnp.dtype(x.dtype).itemsize
    budget = (_vmem_budget_bytes() if vmem_budget_bytes is None
              else int(vmem_budget_bytes))

    if not force_streaming:
        tile_d = _pick_single_pass_tile_d(n, d, itemsize, budget)
        if tile_d is not None:
            return _softmax_single_pass(x, tile_d, budget)

    tile_n, tile_d = _pick_streaming_tiles(n, d, itemsize, budget)
    if streaming_tile_n is not None:
        tile_n = int(streaming_tile_n)
    if streaming_tile_d is not None:
        tile_d = int(streaming_tile_d)
    return _softmax_streaming(x, tile_n, tile_d, budget)


if __name__ == "__main__":
    key = jax.random.PRNGKey(0)
    k1, k2 = jax.random.split(key)

    # Small shape consistent with the module: seq=8 rows (reduction axis),
    # hidden=32 columns.  Exercises the single-pass path.
    x = jax.random.normal(k1, (8, 32), dtype=jnp.float32)
    out = jax.block_until_ready(softmax_stable(x))
    ref = jax.nn.softmax(x, axis=0)
    assert out.shape == ref.shape and out.dtype == ref.dtype
    assert jnp.allclose(out, ref, atol=1e-5, rtol=1e-4), "mismatch vs reference"
    assert jnp.allclose(jnp.sum(out, axis=0), jnp.ones((32,), jnp.float32),
                        atol=1e-4), "columns do not sum to 1"

    # Also exercise the large-N streaming path on a shape that is ragged in
    # both N (80 = 2*32 + 16) and D (200 = 128 + 72) to validate the online
    # reduction, row masking, and masked partial stores.
    x2 = jax.random.normal(k2, (80, 200), dtype=jnp.float32)
    out2 = jax.block_until_ready(
        softmax_stable(x2, force_streaming=True,
                       streaming_tile_n=32, streaming_tile_d=128))
    ref2 = jax.nn.softmax(x2, axis=0)
    assert jnp.allclose(out2, ref2, atol=1e-5, rtol=1e-4), "streaming mismatch"
    assert jnp.allclose(jnp.sum(out2, axis=0), jnp.ones((200,), jnp.float32),
                        atol=1e-4), "streaming columns do not sum to 1"

    print("KERNEL_OK")
</pallas_src>

<mosaic_0001>
module attributes {stable_mosaic.version = 11 : i64} {
  func.func @_softmax_single_pass_kernel(%arg0: i32, %arg1: memref<8x32xf32, #tpu.memory_space<vmem>>, %arg2: memref<8x32xf32, #tpu.memory_space<vmem>>) attributes {dimension_semantics = [#tpu.dimension_semantics<parallel>], iteration_bounds = array<i64: 1>, scalar_prefetch = 0 : i64, scratch_operands = 0 : i64, tpu.core_type = #tpu.core_type<tc>, window_params = [{transform_indices = @transform_0, window_bounds = array<i64: 8, 32>}, {transform_indices = @transform_1, window_bounds = array<i64: 8, 32>}]} {
    %c0 = arith.constant 0 : index
    %c0_0 = arith.constant 0 : index
    %0 = vector.load %arg1[%c0, %c0_0] : memref<8x32xf32, #tpu.memory_space<vmem>>, vector<8x32xf32>
    %cst = arith.constant dense<0xFF800000> : vector<32xf32>
    %1 = vector.multi_reduction <maximumf>, %0, %cst [0] : vector<8x32xf32> to vector<32xf32>
    %2 = vector.shape_cast %1 : vector<32xf32> to vector<1x32xf32>
    %3 = vector.broadcast %2 : vector<1x32xf32> to vector<8x32xf32>
    %4 = arith.subf %0, %3 : vector<8x32xf32>
    %5 = math.exp %4 : vector<8x32xf32>
    %cst_1 = arith.constant dense<0.000000e+00> : vector<32xf32>
    %6 = vector.multi_reduction <add>, %5, %cst_1 [0] : vector<8x32xf32> to vector<32xf32>
    %7 = vector.shape_cast %6 : vector<32xf32> to vector<1x32xf32>
    %8 = tpu.reciprocal %7 : vector<1x32xf32> -> vector<1x32xf32>
    %9 = vector.broadcast %8 : vector<1x32xf32> to vector<8x32xf32>
    %10 = arith.mulf %5, %9 : vector<8x32xf32>
    %c0_2 = arith.constant 0 : index
    %c0_3 = arith.constant 0 : index
    %11 = vector.load %arg2[%c0_2, %c0_3] : memref<8x32xf32, #tpu.memory_space<vmem>>, vector<8x32xf32>
    tpu.vector_store %arg2[%c0_2, %c0_3], %10 {strides = array<i32>} : memref<8x32xf32, #tpu.memory_space<vmem>>, vector<8x32xf32>,
    return
  }
  func.func @transform_0(%arg0: i32) -> (i32, i32) {
    %c0_i32 = arith.constant 0 : i32
    %c0_i32_0 = arith.constant 0 : i32
    return %c0_i32, %arg0 : i32, i32
  }
  func.func @transform_1(%arg0: i32) -> (i32, i32) {
    %c0_i32 = arith.constant 0 : i32
    %c0_i32_0 = arith.constant 0 : i32
    return %c0_i32, %arg0 : i32, i32
  }
}

</mosaic_0001>

<bundles_post_ra>
// kernel: tpu_custom_call.1
= control target key start
LH: loop header
LB: loop body
LE: loop exit
PB: predicated region body
PF: predicated region fallthrough
CT: control target
= control target key end

     0   :  { %6 = vsyncpa [#allocation3], 0  ;;  %s151_s0 = inlined_call_operand.hbm [shape: f32[8,32], index: 0, kind: input, shape index: {}]   ;;  %s152_s1 = inlined_call_operand.hbm [shape: f32[8,32], index: 1, kind: output, shape index: {}]  }
   0x1   :  { %7 = vsyncpa [#allocation4], 0  ;;  %s112_s6 = smov [#allocation2]   ;;  %s64_s10 = scalar_lea.hbm %s151_s0, 128 }
   0x2   :  { %s14_s7 = sshll.u32 %s112_s6, 4  ;;  %p65_p0 = scmp.ne.s32.totalorder %s151_s0, %s64_s10  ;;  %s15_s7 = int_to_ptr.vmem [resolvable:$true] %s14_s7 }
   0x3   :  { %p68_p1 = scmp.lt.u32.totalorder %s64_s10, %s151_s0 }
   0x5   :  { %p70_p2 = pnand %p68_p1, %p65_p0 }
   0x7   :  { %73 = shalt.err (!%p70_p2)
}
   0x8   :  { %s74_s15 = scalar_lea.vmem %s15_s7, 128  ;;  %p79_p4 = scmp.lt.s32.totalorder %s15_s7, %s15_s7 }
   0x9   :  { %p75_p3 = scmp.ne.s32.totalorder %s15_s7, %s74_s15  ;;  %p80_p5 = scmp.lt.s32.totalorder %s74_s15, %s74_s15 }
   0xb   :  { %p81_p6 = por %p80_p5, %p79_p4 }
   0xd   :  { %p82_p7 = pnand %p81_p6, %p75_p3 }
   0xf   :  { %85 = shalt.err (!%p82_p7)
}
  0x10   :  { %17 = dma.hbm_to_vmem [thread:$0]  %s151_s0, 128, %s15_s7, [#allocation3]  }
  0x11   :  { %108 = dma.done.wait [#allocation3], 128  }
  0x12   :  { %109 = vsyncadd [#allocation3], 4294967168  ;;  %vm22_vm0 = vcmask 261120   ;;  %v21_v0 = vld [vmem:[#allocation2] sm:$0xff]  ;;  %s113_s0 = smov [#allocation5]  }
  0x13   :  { %v23_v1 = vsel %vm22_vm0, %v21_v0, -inf  ;;  %s49_s18 = sshll.u32 %s113_s0, 4  ;;  %s50_s18 = int_to_ptr.vmem [resolvable:$true] %s49_s18 }
  0x14   :  { %v24_v2 = vrot.slane %v23_v1, 4  ;;  %s86_s19 = scalar_lea.vmem %s50_s18, 128  ;;  %p91_p9 = scmp.lt.s32.totalorder %s50_s18, %s50_s18 }
  0x15   :  { %p87_p8 = scmp.ne.s32.totalorder %s50_s18, %s86_s19  ;;  %p92_p10 = scmp.lt.s32.totalorder %s86_s19, %s86_s19 }
  0x16   :  { %v25_v3 = vmax.f32 %v23_v1, %v24_v2 }
  0x17   :  { %p93_p11 = por %p92_p10, %p91_p9 }
  0x18   :  { %v26_v4 = vrot.slane %v25_v3, 2 }
  0x19   :  { %p94_p12 = pnand %p93_p11, %p87_p8 }
  0x1a   :  { %v27_v5 = vmax.f32 %v25_v3, %v26_v4 }
  0x1c   :  { %v28_v6 = vrot.slane %v27_v5, 1 }
  0x1e   :  { %v29_v7 = vmax.f32 %v27_v5, %v28_v6 }
  0x20   :  { %v30_v8 = vsub.f32 %v21_v0, %v29_v7 }
  0x22   :  { %v31_v9 = vmul.f32 1.442695, %v30_v8 }
  0x24   :  { %60 = vpow2.f32 %v31_v9 }
  0x2e   :  { %v61_v10 = vpop.eup %60 }
  0x2f   :  { %v33_v11 = vsel %vm22_vm0, %v61_v10, 0.0 }
  0x30   :  { %v34_v12 = vrot.slane %v33_v11, 4 }
  0x32   :  { %v35_v13 = vadd.f32 %v34_v12, %v33_v11 }
  0x34   :  { %v36_v14 = vrot.slane %v35_v13, 2 }
  0x36   :  { %v37_v15 = vadd.f32 %v36_v14, %v35_v13 }
  0x38   :  { %v38_v16 = vrot.slane %v37_v15, 1 }
  0x3a   :  { %v39_v17 = vadd.f32 %v38_v16, %v37_v15 }
  0x3c   :  { %62 = vrcp.f32 %v39_v17 }
  0x46   :  { %v63_v18 = vpop.eup %62 }
  0x47   :  { %v41_v19 = vmul.f32 %v63_v18, %v61_v10 }
  0x49   :  { %42 = vst.msk [vmem:[#allocation5] sm:$0xff] %vm22_vm0, %v41_v19 }
  0x4a   :  { %97 = shalt.err (!%p94_p12)
}
  0x4b   :  { %s98_s22 = scalar_lea.hbm %s152_s1, 128 }
  0x4c   :  { %p99_p13 = scmp.ne.s32.totalorder %s152_s1, %s98_s22  ;;  %p102_p0 = scmp.lt.u32.totalorder %s98_s22, %s152_s1 }
  0x4e   :  { %p104_p1 = pnand %p102_p0, %p99_p13 }
  0x50   :  { %107 = shalt.err (!%p104_p1)
}
  0x51   :  { %52 = dma.vmem_to_hbm [thread:$0]  %s50_s18, 128, %s152_s1, [#allocation4]  }
  0x52   :  { %110 = dma.done.wait [#allocation4], 128  }
  0x53   :  { %111 = vsyncadd [#allocation4], 4294967168 }
  0x54   :  { %56 = vsyncpa [#allocation3], 1 }
  0x55   :  { %57 = vsyncpa [#allocation4], 1 }

</bundles_post_ra>
